<compile_context>
chip_gen: v6e
topology: v6e:2x2x1
jax: 0.10.0
libtpu: 0.0.40
codegen_flags: <defaults>
</compile_context>

<pallas_src>
import functools

import jax
import jax.numpy as jnp
import numpy as np
from jax.experimental import pallas as pl
from jax.experimental.pallas import tpu as pltpu


def _ldam_loss_kernel(x_ref, tgt_ref, bm_ref, o_ref, *, s, n_total, block_n):
    pid = pl.program_id(0)

    x = x_ref[...].astype(jnp.float32)            # (TN, C) logits
    tgt = tgt_ref[...]                            # (TN, 1) int32 labels
    bm = bm_ref[...]                              # (TN, 1) f32 per-sample margin

    tn, c = x.shape
    col = jax.lax.broadcasted_iota(jnp.int32, (tn, c), 1)
    mask = col == tgt                             # (TN, C) bool, reused 2x

    # output = where(index, x - batch_m, x); scaled logits for CE.
    logits = s * jnp.where(mask, x - bm, x)       # (TN, C)

    # Numerically stable logsumexp per row (exp -> EUP, row reduces -> XLU).
    row_max = jnp.max(logits, axis=1, keepdims=True)
    sum_exp = jnp.sum(jnp.exp(logits - row_max), axis=1, keepdims=True)
    lse = row_max + jnp.log(sum_exp)              # (TN, 1)

    # Target logit s * (x[target] - batch_m) pulled straight out of `logits`.
    tgt_logit = jnp.sum(jnp.where(mask, logits, 0.0), axis=1, keepdims=True)

    per_sample = lse - tgt_logit                  # (TN, 1)

    # Mask padded rows of a ragged last tile out of the partial sum.
    row = pid * block_n + jax.lax.broadcasted_iota(jnp.int32, (tn, 1), 0)
    valid = row < n_total
    partial = jnp.sum(jnp.where(valid, per_sample, 0.0))

    # Lane/sublane-aligned (1, 8, 128) partial-sum block (unmasked store).
    o_ref[...] = jnp.full((1, 8, 128), partial, dtype=jnp.float32)


def _choose_block_n(n, c, elem_bytes):
    """Pick a batch tile size that keeps double-buffered tiles well under the
    scoped VMEM limit (sized conservatively for v7x's 64 MiB physical VMEM)."""
    budget = 8 * 1024 * 1024                      # ~8 MiB of tile traffic
    per_row = 2 * c * elem_bytes + 2 * 2 * 4      # x double-buffered + tgt/bm
    tn = max(1, budget // max(per_row, 1))
    tn = min(tn, n)
    if tn < n:
        tn = max(8, (tn // 8) * 8)                # (8, 128) sublane rule
    return int(tn)


def ldam_loss(x, target, m_list, s=30.0, block_n=None):
    """x: (N, C) float32/bfloat16 logits, target: (N,) ints, m_list: (C,) f32."""
    n, c = x.shape
    target = target.astype(jnp.int32)
    tgt2d = target.reshape(n, 1)
    # Per-sample margin gather done once in XLA (O(N) work, removes an
    # O(N*C) multiply + row-reduce from the kernel).
    batch_m = jnp.take(m_list.astype(jnp.float32), target).reshape(n, 1)

    elem_bytes = jnp.dtype(x.dtype).itemsize
    if block_n is None:
        block_n = _choose_block_n(n, c, elem_bytes)
    block_n = int(min(block_n, n))
    if block_n < n and block_n % 8 != 0:
        block_n = max(8, (block_n // 8) * 8)
    num_tiles = pl.cdiv(n, block_n)

    kernel = functools.partial(
        _ldam_loss_kernel, s=float(s), n_total=int(n), block_n=int(block_n))

    partials = pl.pallas_call(
        kernel,
        out_shape=jax.ShapeDtypeStruct((num_tiles, 8, 128), jnp.float32),
        grid=(num_tiles,),
        in_specs=[
            pl.BlockSpec((block_n, c), lambda i: (i, 0)),      # x tile
            pl.BlockSpec((block_n, 1), lambda i: (i, 0)),      # target tile
            pl.BlockSpec((block_n, 1), lambda i: (i, 0)),      # batch_m tile
        ],
        out_specs=pl.BlockSpec((1, 8, 128), lambda i: (i, 0, 0)),
        compiler_params=pltpu.CompilerParams(
            dimension_semantics=("parallel",),
            vmem_limit_bytes=32 * 1024 * 1024,
        ),
    )(x, tgt2d, batch_m)

    # Trivial final reduce + mean in the wrapper (precomputed 1/N multiply).
    return partials[:, 0, 0].sum() * (1.0 / float(n))


def make_m_list(cls_num_list, max_m=0.5):
    """Deterministic margin list, exactly as LDAMLoss.__init__."""
    m = 1.0 / np.sqrt(np.sqrt(np.asarray(cls_num_list, dtype=np.float64)))
    m = m * (max_m / np.max(m))
    return jnp.asarray(m, dtype=jnp.float32)


if __name__ == "__main__":
    # Small synthetic problem: N=20 samples, C=16 classes.
    # block_n=8 forces multiple grid steps plus a ragged last tile.
    N, C = 20, 16
    key = jax.random.PRNGKey(0)
    kx, kt = jax.random.split(key)

    x = jax.random.normal(kx, (N, C), dtype=jnp.float32)
    target = jax.random.randint(kt, (N,), 0, C, dtype=jnp.int32)

    # Deterministic imbalanced class-count list, as LDAM expects.
    cls_num_list = [1000 // (i + 1) + 1 for i in range(C)]
    m_list = make_m_list(cls_num_list, max_m=0.5)

    loss = ldam_loss(x, target, m_list, s=30.0, block_n=8)
    jax.block_until_ready(loss)

    # Pure-JAX reference check (same math, outside Pallas).
    one_hot = jax.nn.one_hot(target, C, dtype=jnp.float32)
    batch_m = (one_hot * m_list[None, :]).sum(axis=1, keepdims=True)
    out_ref = jnp.where(one_hot > 0, x - batch_m, x)
    logits = 30.0 * out_ref
    lse = jax.scipy.special.logsumexp(logits, axis=1)
    ref = jnp.mean(lse - jnp.sum(one_hot * logits, axis=1))
    assert jnp.allclose(loss, ref, rtol=1e-5, atol=1e-5), (loss, ref)

    print("KERNEL_OK")
</pallas_src>

<mosaic_0001>
module attributes {stable_mosaic.version = 11 : i64} {
  func.func @_ldam_loss_kernel(%arg0: i32, %arg1: memref<8x16xf32, #tpu.memory_space<vmem>>, %arg2: memref<8x1xi32, #tpu.memory_space<vmem>>, %arg3: memref<8x1xf32, #tpu.memory_space<vmem>>, %arg4: memref<1x8x128xf32, #tpu.memory_space<vmem>>) attributes {dimension_semantics = [#tpu.dimension_semantics<parallel>], iteration_bounds = array<i64: 3>, scalar_prefetch = 0 : i64, scratch_operands = 0 : i64, tpu.core_type = #tpu.core_type<tc>, window_params = [{transform_indices = @transform_0, window_bounds = array<i64: 8, 16>}, {transform_indices = @transform_1, window_bounds = array<i64: 8, 1>}, {transform_indices = @transform_2, window_bounds = array<i64: 8, 1>}, {transform_indices = @transform_3, window_bounds = array<i64: 1, 8, 128>}]} {
    %c0 = arith.constant 0 : index
    %c0_0 = arith.constant 0 : index
    %0 = vector.load %arg1[%c0, %c0_0] : memref<8x16xf32, #tpu.memory_space<vmem>>, vector<8x16xf32>
    %c0_1 = arith.constant 0 : index
    %c0_2 = arith.constant 0 : index
    %1 = vector.load %arg2[%c0_1, %c0_2] : memref<8x1xi32, #tpu.memory_space<vmem>>, vector<8x1xi32>
    %c0_3 = arith.constant 0 : index
    %c0_4 = arith.constant 0 : index
    %2 = vector.load %arg3[%c0_3, %c0_4] : memref<8x1xf32, #tpu.memory_space<vmem>>, vector<8x1xf32>
    %3 = tpu.iota {dimensions = array<i32: 1>} : vector<8x16xi32>
    %4 = vector.broadcast %1 : vector<8x1xi32> to vector<8x16xi32>
    %5 = arith.cmpi eq, %3, %4 : vector<8x16xi32>
    %6 = vector.broadcast %2 : vector<8x1xf32> to vector<8x16xf32>
    %7 = arith.subf %0, %6 : vector<8x16xf32>
    %8 = arith.select %5, %7, %0 : vector<8x16xi1>, vector<8x16xf32>
    %cst = arith.constant 3.000000e+01 : f32
    %9 = vector.broadcast %cst : f32 to vector<8x16xf32>
    %10 = arith.mulf %9, %8 : vector<8x16xf32>
    %cst_5 = arith.constant dense<0xFF800000> : vector<8xf32>
    %11 = vector.multi_reduction <maximumf>, %10, %cst_5 [1] : vector<8x16xf32> to vector<8xf32>
    %12 = vector.shape_cast %11 : vector<8xf32> to vector<8x1xf32>
    %13 = vector.broadcast %12 : vector<8x1xf32> to vector<8x16xf32>
    %14 = arith.subf %10, %13 : vector<8x16xf32>
    %15 = math.exp %14 : vector<8x16xf32>
    %cst_6 = arith.constant dense<0.000000e+00> : vector<8xf32>
    %16 = vector.multi_reduction <add>, %15, %cst_6 [1] : vector<8x16xf32> to vector<8xf32>
    %17 = vector.shape_cast %16 : vector<8xf32> to vector<8x1xf32>
    %18 = math.log %17 : vector<8x1xf32>
    %19 = arith.addf %12, %18 : vector<8x1xf32>
    %cst_7 = arith.constant 0.000000e+00 : f32
    %20 = vector.broadcast %cst_7 : f32 to vector<8x16xf32>
    %21 = arith.select %5, %10, %20 : vector<8x16xi1>, vector<8x16xf32>
    %cst_8 = arith.constant dense<0.000000e+00> : vector<8xf32>
    %22 = vector.multi_reduction <add>, %21, %cst_8 [1] : vector<8x16xf32> to vector<8xf32>
    %23 = vector.shape_cast %22 : vector<8xf32> to vector<8x1xf32>
    %24 = arith.subf %19, %23 : vector<8x1xf32>
    %c8_i32 = arith.constant 8 : i32
    %25 = arith.muli %arg0, %c8_i32 : i32
    %26 = tpu.iota {dimensions = array<i32: 0>} : vector<8x1xi32>
    %27 = vector.broadcast %25 : i32 to vector<8x1xi32>
    %28 = arith.addi %27, %26 : vector<8x1xi32>
    %c20_i32 = arith.constant 20 : i32
    %29 = vector.broadcast %c20_i32 : i32 to vector<8x1xi32>
    %30 = arith.cmpi slt, %28, %29 : vector<8x1xi32>
    %cst_9 = arith.constant 0.000000e+00 : f32
    %31 = vector.broadcast %cst_9 : f32 to vector<8x1xf32>
    %32 = arith.select %30, %24, %31 : vector<8x1xi1>, vector<8x1xf32>
    %33 = vector.shape_cast %32 : vector<8x1xf32> to vector<1x8x1xf32>
    %cst_10 = arith.constant dense<0.000000e+00> : vector<1xf32>
    %34 = vector.multi_reduction <add>, %33, %cst_10 [1, 2] : vector<1x8x1xf32> to vector<1xf32>
    %35 = vector.shape_cast %34 : vector<1xf32> to vector<1x1x1xf32>
    %36 = vector.extract %35[0, 0, 0] : f32 from vector<1x1x1xf32>
    %37 = vector.broadcast %36 : f32 to vector<1x8x128xf32>
    %c0_11 = arith.constant 0 : index
    %c0_12 = arith.constant 0 : index
    %c0_13 = arith.constant 0 : index
    %38 = vector.load %arg4[%c0_11, %c0_12, %c0_13] : memref<1x8x128xf32, #tpu.memory_space<vmem>>, vector<1x8x128xf32>
    tpu.vector_store %arg4[%c0_11, %c0_12, %c0_13], %37 {strides = array<i32>} : memref<1x8x128xf32, #tpu.memory_space<vmem>>, vector<1x8x128xf32>,
    return
  }
  func.func @transform_0(%arg0: i32) -> (i32, i32) {
    %c0_i32 = arith.constant 0 : i32
    %c0_i32_0 = arith.constant 0 : i32
    return %arg0, %c0_i32 : i32, i32
  }
  func.func @transform_1(%arg0: i32) -> (i32, i32) {
    %c0_i32 = arith.constant 0 : i32
    %c0_i32_0 = arith.constant 0 : i32
    return %arg0, %c0_i32 : i32, i32
  }
  func.func @transform_2(%arg0: i32) -> (i32, i32) {
    %c0_i32 = arith.constant 0 : i32
    %c0_i32_0 = arith.constant 0 : i32
    return %arg0, %c0_i32 : i32, i32
  }
  func.func @transform_3(%arg0: i32) -> (i32, i32, i32) {
    %c0_i32 = arith.constant 0 : i32
    %c0_i32_0 = arith.constant 0 : i32
    %c0_i32_1 = arith.constant 0 : i32
    return %arg0, %c0_i32, %c0_i32_0 : i32, i32, i32
  }
}

</mosaic_0001>

<bundles_post_ra>
// kernel: tpu_custom_call.1
= control target key start
LH: loop header
LB: loop body
LE: loop exit
PB: predicated region body
PF: predicated region fallthrough
CT: control target
= control target key end

     0   :  { %8 = vsyncpa [#allocation3], 0  ;;  %s596_s0 = inlined_call_operand.vmem [shape: f32[20,16], index: 0, kind: input, shape index: {}]   ;;  %s597_s1 = inlined_call_operand.vmem [shape: s32[20,1], index: 1, kind: input, shape index: {}]   ;;  %s598_s2 = inlined_call_operand.vmem [shape: f32[20,1], index: 2, kind: input, shape index: {}]   ;;  %s599_s3 = inlined_call_operand.hbm [shape: f32[3,8,128], index: 3, kind: output, shape index: {}]  }
   0x1   :  { %10 = vsyncpa [#allocation3 + $0x1], 0  ;;  %s496_s12 = smov 0   ;;  %s498_s13 = smov 0  }
   0x2   :  { %s500_s14 = smov 0   ;;  %s502_s15 = smov 0  }
   0x3 LB: > { %s517_s16 = sadd.s32 4294967295, %s472_s15   ;;  %s352_s17 = sadd.s32 4294967294, %s472_s15   ;;  %s472_s15 = sphi %s502_s15, %s605_s15   ;;  %s468_s14 = sphi %s500_s14, %s604_s14   ;;  %s464_s13 = sphi %s498_s13, %s603_s13   ;;  %s460_s12 = sphi %s496_s12, %s602_s12  }
   0x4   : > { %s521_s18 = sadd.s32 1, %s472_s15   ;;  %s101_s19 = sadd.s32 1, %s468_s14 }
   0x5   : > { %s98_s20 = ssub.s32 %s472_s15, %s521_s18  ;;  %p111_p0 = scmp.ne.s32.totalorder %s468_s14, %s464_s13 }
   0x6   : > { %p99_p1 = scmp.eq.s32.totalorder %s98_s20, 0  ;;  %p112_p2 = scmp.eq.s32.totalorder %s517_s16, 2 }
   0x7   : > { %p117_p3 = scmp.ne.s32.totalorder %s464_s13, %s460_s12  ;;  %p118_p4 = scmp.eq.s32.totalorder %s352_s17, 2 }
   0x8   : > { %s532_s21 = scalar_select %p99_p1, %s468_s14, %s101_s19  }
   0x9   : > { %p534_p5 = por %p112_p2, %p111_p0  ;;  %p538_p6 = por %p118_p4, %p117_p3 }
   0xa   : > { %p355_p7 = scmp.ge.s32.totalorder %s472_s15, 1  ;;  %p157_p8 = scmp.lt.s32.totalorder %s472_s15, 4 }
   0xc   : > { %p158_p9 = pnand %p355_p7, %p157_p8 }
   0xd   : > { %p188_p10 = scmp.lt.s32.totalorder (!%p158_p9), %s517_s16, 2  ;;  %s360_s8 = sshll.u32 (!%p158_p9), %s517_s16, 3 }
   0xe   : > { %161 = sbr.rel (%p158_p9) target bundleno = 688 (0x2b0), region = 32  ;;  %s185_s9 = sand.u32 (!%p158_p9), 1, %s464_s13  }
   0xf   : > { %s356_s10 = sshll.u32 (!%p158_p9), %s185_s9, 3  ;;  %s362_s19 = sshll.u32 (!%p158_p9), %s517_s16, 7 }
  0x10   : > { %s187_s11 = scalar_lea.vmem (!%p158_p9), [#allocation2], %s356_s10  ;;  %s267_s26 = scalar_lea.hbm (!%p158_p9), %s599_s3, %s362_s19 }
  0x11   : > { %s269_s17 = sshll.u32 (!%p158_p9), %s187_s11, 4  ;;  %s256_s27 = scalar_lea.sflag (!%p158_p9), [#allocation3], %s185_s9  ;;  %s558_s17 = int_to_ptr.vmem [resolvable:$true] %s269_s17 }
  0x12   : > { %s475_s29 = smov (!%p158_p9), [#allocation2]  }
  0x13   : > { %v474_v0 = vmov 0   ;;  %s189_s24 = scalar_select %p188_p10, %s517_s16, 2  ;;  %v203_v3 = vlaneseq  ;;  %vm217_vm1 = vcmask 130048   ;;  %v238_v21 = vstv %s360_s8 }
  0x14   : > { %407 = vset.pattern.permute.xlu0 %v474_v0  ;;  %vm242_vm3 = vcmask 7168   ;;  %s416_s16 = sshll.u32 %s475_s29, 4  ;;  %s417_s16 = int_to_ptr.vmem [resolvable:$false] %s416_s16 }
  0x15   : > { %s357_s25 = sshll.u32 %s189_s24, 3  ;;  %v204_v6 = vand.u32 127, %v203_v3  ;;  %v237_v20 = vshrl.u32 %v203_v3, 7  ;;  %s418_s30 = scalar_lea.vmem %s417_s16, 256 }
  0x16   : > { %s199_s28 = scalar_lea.vmem %s598_s2, %s357_s25  ;;  %s195_s4 = scalar_lea.vmem %s597_s1, %s357_s25 }
  0x17   : > { %v202_v1 = vld [vmem:[%s199_s28] sm:$0xff]  ;;  %s191_s7 = scalar_lea.vmem %s596_s0, %s357_s25  ;;  %v239_v23 = vadd.s32 %v238_v21, %v237_v20  ;;  %s412_s28 = scalar_lea.vmem %s558_s17, 128 }
  0x18   : > { %211 = vperm.xlu0 %407, %v202_v1   ;;  %v201_v2 = vld [vmem:[%s195_s4] sm:$0xff]  ;;  %p413_p11 = scmp.ne.s32.totalorder %s558_s17, %s412_s28  ;;  %p419_p0 = scmp.lt.s32.totalorder %s558_s17, %s417_s16 }
  0x19   : > { %v200_v5 = vld [vmem:[%s191_s7] sm:$0xff]  ;;  %vm240_vm2 = vcmp.lt.s32.totalorder %v239_v23, 20  ;;  %p420_p1 = scmp.lt.s32.totalorder %s418_s30, %s412_s28 }
  0x1a   : > { %p414_p12 = pnand %p413_p11, %p534_p5 }
  0x1b   : > { %p421_p2 = por %p420_p1, %p419_p0 }
  0x1c   : > { %206 = vperm.xlu0 %407, %v201_v2   ;;  %p415_p13 = pneg %p414_p12 }
  0x1e   : > { %p422_p3 = pnand %p421_p2, %p415_p13 }
  0x93   : > { %v212_v4 = vpop.permute.xlu0 %211 }
  0x94   : > { %v214_v7 = vsub.f32 %v200_v5, %v212_v4 }
  0x97   : > { %v207_v8 = vpop.permute.xlu0 %206 }
  0x98   : > { %vm208_vm0 = vcmp.eq.s32.totalorder %v204_v6, %v207_v8 }
  0x99   : > { %v215_v9 = vsel %vm208_vm0, %v214_v7, %v200_v5 }
  0x9a   : > { %v216_v10 = vmul.f32 30.0, %v215_v9 }
  0x9c   : > { %v218_v11 = vsel %vm217_vm1, %v216_v10, -inf  ;;  %v230_v12 = vsel %vm208_vm0, %v216_v10, 0.0 }
  0x9d   : > { %219 = vmax.xlane.f32.xlu1 %v218_v11  ;;  %v231_v13 = vsel %vm217_vm1, %v230_v12, 0.0 }
  0x9e   : > { %232 = vadd.xlane.f32.xlu0 %v231_v13 }
 0x126   : > { %v220_v14 = vpop.xlane.xlu1 %219 }
 0x127   : > { %v221_v15 = vsub.f32 %v216_v10, %v220_v14  ;;  %v233_v26 = vpop.xlane.xlu0 %232 }
 0x129   : > { %v222_v16 = vmul.f32 1.442695, %v221_v15 }
 0x12b   : > { %408 = vpow2.f32 %v222_v16 }
 0x138   : > { %v409_v17 = vpop.eup %408 }
 0x139   : > { %v224_v18 = vsel %vm217_vm1, %v409_v17, 0.0 }
 0x13a   : > { %225 = vadd.xlane.f32.xlu1 %v224_v18 }
 0x1c3   : > { %v226_v19 = vpop.xlane.xlu1 %225 }
 0x1c4   : > { %410 = vlog2.f32 %v226_v19 }
 0x1d1   : > { %v411_v22 = vpop.eup %410 }
 0x1d2   : > { %v228_v24 = vmul.f32 0.6931472, %v411_v22 }
 0x1d4   : > { %v229_v25 = vadd.f32 %v228_v24, %v220_v14 }
 0x1d6   : > { %v234_v27 = vsub.f32 %v229_v25, %v233_v26 }
 0x1d8   : > { %v241_v28 = vsel %vm240_vm2, %v234_v27, 0.0 }
 0x1d9   : > { %v243_v29 = vsel %vm242_vm3, %v241_v28, 0.0 }
 0x1da   : > { %244 = vadd.xlane.f32.xlu1 %v243_v29 }
 0x263   : > { %v245_v30 = vpop.xlane.xlu1 %244 }
 0x264   : > { %v246_v31 = vrot.slane %v245_v30, 4 }
 0x266   : > { %v247_v32 = vadd.f32 %v246_v31, %v245_v30 }
 0x268   : > { %v248_v33 = vrot.slane %v247_v32, 2 }
 0x26a   : > { %v249_v34 = vadd.f32 %v248_v33, %v247_v32 }
 0x26c   : > { %v250_v35 = vrot.slane %v249_v34, 1 }
 0x26e   : > { %v251_v36 = vadd.f32 %v250_v35, %v249_v34 }
 0x270   : > { %365 = vpush %v251_v36 }
 0x2a1   : > { %s366_s20 = spop %365 }
 0x2a2   : > { %v253_v37 = vstv %s366_s20 }
 0x2a3   : > { %254 = vst [vmem:[%s187_s11] sm:$0xff] %v253_v37 }
 0x2a4   : > { %425 = shalt.err (!%p422_p3)
}
 0x2a5   : > { %s426_s4 = scalar_lea.hbm %s267_s26, 128  ;;  %s430_s7 = scalar_lea.hbm %s599_s3, 384 }
 0x2a6   : > { %p427_p4 = scmp.ne.s32.totalorder %s267_s26, %s426_s4  ;;  %p431_p9 = scmp.lt.s32.totalorder %s267_s26, %s599_s3 }
 0x2a7   : > { %p432_p10 = scmp.lt.s32.totalorder %s430_s7, %s426_s4 }
 0x2a8   : > { %p428_p7 = pnand %p427_p4, %p534_p5 }
 0x2a9   : > { %p433_p11 = por %p432_p10, %p431_p9 }
 0x2aa   : > { %p429_p8 = pneg %p428_p7 }
 0x2ac   : > { %p434_p12 = pnand %p433_p11, %p429_p8 }
 0x2ae   : > { %437 = shalt.err (!%p434_p12)
}
 0x2af   : > { %367 = dma.vmem_to_hbm [thread:$0]  (%p534_p5), %s558_s17, 128, %s267_s26, %s256_s27  }
 0x2b0 PF: > { %p373_p13 = scmp.ge.s32.totalorder %s472_s15, 2  ;;  %s281_s10 = sand.u32 1, %s460_s12  }
 0x2b1   : > { %s282_s11 = scalar_lea.sflag [#allocation3], %s281_s10 }
 0x2b2   : > { %p370_p0 = pnand %p373_p13, %p538_p6 }
 0x2b4   : > { %p371_p1 = pneg %p370_p0 }
 0x2b6   : > { %455 = dma.done.wait (%p371_p1), %s282_s11, 128  }
 0x2b7   : > { %457 = vsyncadd (%p371_p1), %s282_s11, 4294967168  ;;  %p13_p2 = scmp.ge.s32.totalorder %s521_s18, 5   ;;  %s602_s12 = smov %s464_s13 }
 0x2b8   : > { %s603_s13 = smov %s468_s14  ;;  %s604_s14 = smov %s532_s21 }
 0x2b9   : > { %s605_s15 = smov %s521_s18  ;;  %15 = sbr.rel (!%p13_p2) target bundleno = 3 (0x3), region = 73 }
 0x2be   :  { %287 = vsyncpa [#allocation3], 1 }
 0x2bf   :  { %289 = vsyncpa [#allocation3 + $0x1], 1 }

</bundles_post_ra>
